<compile_context>
chip_gen: v7x
topology: tpu7x:2x2x1
jax: 0.10.0
libtpu: 0.0.40
codegen_flags: <defaults>
</compile_context>

<pallas_src>
import jax
import jax.numpy as jnp
from jax import lax
from jax.experimental import pallas as pl
from jax.experimental.pallas import tpu as pltpu


def _embed_kernel(ids_ref, table_ref, out_ref):
    """One grid step: embed a tile of `tb` tokens via a one-hot MXU matmul.

    ids_ref   : VMEM (tb, 1) int32  -- token ids for this tile
    table_ref : VMEM (V, E)         -- full embedding table (row 0 == zeros)
    out_ref   : VMEM (tb, E)        -- output tile
    """
    ids = ids_ref[...]                                    # (tb, 1)
    tb = out_ref.shape[0]
    V = table_ref.shape[0]
    col = lax.broadcasted_iota(jnp.int32, (tb, V), 1)     # vocab index per lane
    onehot = (col == ids).astype(table_ref.dtype)         # OOB ids -> zero row
    out_ref[...] = jnp.dot(
        onehot, table_ref[...], preferred_element_type=jnp.float32
    ).astype(out_ref.dtype)


def _round_up(x, m):
    return ((x + m - 1) // m) * m


def _pick_token_block(n, vocab, embed, itemsize, token_block):
    """Largest multiple-of-8 tile <= token_block whose per-step working set
    (one-hot intermediate + double-buffered output) stays small in VMEM."""
    tb = min(token_block, _round_up(n, 8))
    cap_onehot = max(8, (4 << 20) // max(4 * vocab, 1))          # ~4 MiB one-hot
    cap_out = max(8, (16 << 20) // max(2 * embed * itemsize, 1))  # ~16 MiB out x2
    tb = min(tb, cap_onehot, cap_out)
    return max(8, (tb // 8) * 8)


def embedding_forward(token_ids, weight, *, token_block=2048):
    """token_ids: (B, S) int -> (B, S, E) in weight.dtype (eval-mode dropout)."""
    B, S = token_ids.shape
    V, E = weight.shape
    N = B * S
    itemsize = jnp.dtype(weight.dtype).itemsize

    tb = _pick_token_block(N, V, E, itemsize, token_block)
    N_pad = _round_up(N, tb)

    ids_flat = token_ids.reshape(N).astype(jnp.int32)
    if N_pad != N:
        # pad with 0 (padding_idx row); padded rows are sliced off below
        ids_flat = jnp.pad(ids_flat, (0, N_pad - N))
    ids_2d = ids_flat.reshape(N_pad, 1)

    grid = (N_pad // tb,)

    def vmem_limit(table_bufs):
        need = (table_bufs * V * E * itemsize    # resident table
                + 2 * tb * 4                     # ids double buffer
                + 2 * tb * E * itemsize          # output double buffer
                + tb * V * 4)                    # one-hot intermediate (f32)
        return int(min(max(2 * need, 4 << 20), 64 << 20))

    def build(pin_table):
        table_kwargs = {"pipeline_mode": pl.Buffered(1)} if pin_table else {}
        return pl.pallas_call(
            _embed_kernel,
            out_shape=jax.ShapeDtypeStruct((N_pad, E), weight.dtype),
            grid=grid,
            in_specs=[
                pl.BlockSpec((tb, 1), lambda i: (i, 0)),
                pl.BlockSpec((V, E), lambda i: (0, 0), **table_kwargs),
            ],
            out_specs=pl.BlockSpec((tb, E), lambda i: (i, 0)),
            compiler_params=pltpu.CompilerParams(
                dimension_semantics=("parallel",),
                vmem_limit_bytes=vmem_limit(1 if pin_table else 2),
            ),
        )

    try:
        out_flat = build(pin_table=True)(ids_2d, weight)
    except Exception:
        # pl.Buffered(1) single-buffering not supported in this jax version;
        # fall back to the default double-buffered resident table.
        out_flat = build(pin_table=False)(ids_2d, weight)

    return out_flat[:N].reshape(B, S, E)


def make_embedding_weight(key, vocab_size, embed_size, dtype=jnp.float32):
    """nn.Embedding(vocab_size, embed_size, padding_idx=0): N(0,1) init,
    padding row (index 0) zeroed."""
    w = jax.random.normal(key, (vocab_size, embed_size), dtype=dtype)
    w = w.at[0].set(0.0)
    return w


if __name__ == "__main__":
    # small, module-consistent shapes
    vocab_size = 32
    embed_size = 128
    batch, seq = 2, 8
    dropout_p = 0.1   # unused at inference (eval mode -> identity)
    bits = 8          # unused by forward

    key = jax.random.PRNGKey(0)
    k_w, k_ids = jax.random.split(key)

    weight = make_embedding_weight(k_w, vocab_size, embed_size)
    token_ids = jax.random.randint(k_ids, (batch, seq), 0, vocab_size,
                                   dtype=jnp.int32)
    token_ids = token_ids.at[0, 0].set(0)   # exercise padding_idx=0 row

    out = embedding_forward(token_ids, weight)
    out = jax.block_until_ready(out)

    # sanity check against plain-JAX reference gather (padding row is zero)
    ref = weight[token_ids]
    assert out.shape == (batch, seq, embed_size)
    assert jnp.allclose(out, ref, atol=1e-6), "mismatch vs reference embedding lookup"
    assert jnp.all(out[0, 0] == 0.0), "padding_idx=0 row must be zero"

    print("KERNEL_OK")
</pallas_src>

<mosaic_0001>
module attributes {stable_mosaic.version = 11 : i64} {
  func.func @_embed_kernel(%arg0: i32, %arg1: memref<16x1xi32, #tpu.memory_space<vmem>>, %arg2: memref<32x128xf32, #tpu.memory_space<vmem>>, %arg3: memref<16x128xf32, #tpu.memory_space<vmem>>) attributes {dimension_semantics = [#tpu.dimension_semantics<parallel>], iteration_bounds = array<i64: 1>, scalar_prefetch = 0 : i64, scratch_operands = 0 : i64, tpu.core_type = #tpu.core_type<tc>, window_params = [{transform_indices = @transform_0, window_bounds = array<i64: 16, 1>}, {pipeline_mode = #tpu.pipeline_mode<synchronous>, transform_indices = @transform_1, window_bounds = array<i64: 32, 128>}, {transform_indices = @transform_2, window_bounds = array<i64: 16, 128>}]} {
    %c0 = arith.constant 0 : index
    %c0_0 = arith.constant 0 : index
    %0 = vector.load %arg1[%c0, %c0_0] : memref<16x1xi32, #tpu.memory_space<vmem>>, vector<16x1xi32>
    %1 = tpu.iota {dimensions = array<i32: 1>} : vector<16x32xi32>
    %2 = vector.broadcast %0 : vector<16x1xi32> to vector<16x32xi32>
    %3 = arith.cmpi eq, %1, %2 : vector<16x32xi32>
    %4 = arith.extui %3 : vector<16x32xi1> to vector<16x32xi32>
    %5 = arith.sitofp %4 : vector<16x32xi32> to vector<16x32xf32>
    %c0_1 = arith.constant 0 : index
    %c0_2 = arith.constant 0 : index
    %6 = vector.load %arg2[%c0_1, %c0_2] : memref<32x128xf32, #tpu.memory_space<vmem>>, vector<32x128xf32>
    %cst = arith.constant dense<0.000000e+00> : vector<16x128xf32>
    %7 = tpu.matmul %5, %6, %cst {dimension_numbers = #tpu.dot_dimension_numbers<[1], [0], [0], [1], [0, 0, 1, 1], [], []>} : vector<16x32xf32>, vector<32x128xf32>, vector<16x128xf32> -> vector<16x128xf32>
    %c0_3 = arith.constant 0 : index
    %c0_4 = arith.constant 0 : index
    %8 = vector.load %arg3[%c0_3, %c0_4] : memref<16x128xf32, #tpu.memory_space<vmem>>, vector<16x128xf32>
    tpu.vector_store %arg3[%c0_3, %c0_4], %7 {strides = array<i32>} : memref<16x128xf32, #tpu.memory_space<vmem>>, vector<16x128xf32>,
    return
  }
  func.func @transform_0(%arg0: i32) -> (i32, i32) {
    %c0_i32 = arith.constant 0 : i32
    %c0_i32_0 = arith.constant 0 : i32
    return %arg0, %c0_i32 : i32, i32
  }
  func.func @transform_1(%arg0: i32) -> (i32, i32) {
    %c0_i32 = arith.constant 0 : i32
    %c0_i32_0 = arith.constant 0 : i32
    %c0_i32_1 = arith.constant 0 : i32
    return %c0_i32, %c0_i32_0 : i32, i32
  }
  func.func @transform_2(%arg0: i32) -> (i32, i32) {
    %c0_i32 = arith.constant 0 : i32
    %c0_i32_0 = arith.constant 0 : i32
    return %arg0, %c0_i32 : i32, i32
  }
}

module attributes {stable_mosaic.version = 11 : i64} {
  func.func @_embed_kernel(%arg0: i32, %arg1: memref<16x1xi32, #tpu.memory_space<vmem>>, %arg2: memref<32x128xf32, #tpu.memory_space<vmem>>, %arg3: memref<16x128xf32, #tpu.memory_space<vmem>>) attributes {dimension_semantics = [#tpu.dimension_semantics<parallel>], iteration_bounds = array<i64: 1>, scalar_prefetch = 0 : i64, scratch_operands = 0 : i64, tpu.core_type = #tpu.core_type<tc>, window_params = [{transform_indices = @transform_0, window_bounds = array<i64: 16, 1>}, {pipeline_mode = #tpu.pipeline_mode<synchronous>, transform_indices = @transform_1, window_bounds = array<i64: 32, 128>}, {transform_indices = @transform_2, window_bounds = array<i64: 16, 128>}]} {
    %c0 = arith.constant 0 : index
    %c0_0 = arith.constant 0 : index
    %0 = vector.load %arg1[%c0, %c0_0] : memref<16x1xi32, #tpu.memory_space<vmem>>, vector<16x1xi32>
    %1 = tpu.iota {dimensions = array<i32: 1>} : vector<16x32xi32>
    %2 = vector.broadcast %0 : vector<16x1xi32> to vector<16x32xi32>
    %3 = arith.cmpi eq, %1, %2 : vector<16x32xi32>
    %4 = arith.extui %3 : vector<16x32xi1> to vector<16x32xi32>
    %5 = arith.sitofp %4 : vector<16x32xi32> to vector<16x32xf32>
    %c0_1 = arith.constant 0 : index
    %c0_2 = arith.constant 0 : index
    %6 = vector.load %arg2[%c0_1, %c0_2] : memref<32x128xf32, #tpu.memory_space<vmem>>, vector<32x128xf32>
    %cst = arith.constant dense<0.000000e+00> : vector<16x128xf32>
    %7 = tpu.matmul %5, %6, %cst {dimension_numbers = #tpu.dot_dimension_numbers<[1], [0], [0], [1], [0, 0, 1, 1], [], []>} : vector<16x32xf32>, vector<32x128xf32>, vector<16x128xf32> -> vector<16x128xf32>
    %c0_3 = arith.constant 0 : index
    %c0_4 = arith.constant 0 : index
    %8 = vector.load %arg3[%c0_3, %c0_4] : memref<16x128xf32, #tpu.memory_space<vmem>>, vector<16x128xf32>
    tpu.vector_store %arg3[%c0_3, %c0_4], %7 {strides = array<i32>} : memref<16x128xf32, #tpu.memory_space<vmem>>, vector<16x128xf32>,
    return
  }
  func.func @transform_0(%arg0: i32) -> (i32, i32) {
    %c0_i32 = arith.constant 0 : i32
    %c0_i32_0 = arith.constant 0 : i32
    return %arg0, %c0_i32 : i32, i32
  }
  func.func @transform_1(%arg0: i32) -> (i32, i32) {
    %c0_i32 = arith.constant 0 : i32
    %c0_i32_0 = arith.constant 0 : i32
    %c0_i32_1 = arith.constant 0 : i32
    return %c0_i32, %c0_i32_0 : i32, i32
  }
  func.func @transform_2(%arg0: i32) -> (i32, i32) {
    %c0_i32 = arith.constant 0 : i32
    %c0_i32_0 = arith.constant 0 : i32
    return %arg0, %c0_i32 : i32, i32
  }
}

</mosaic_0001>

<bundles_post_ra>
// kernel: tpu_custom_call.1
= control target key start
LH: loop header
LB: loop body
LE: loop exit
PB: predicated region body
PF: predicated region fallthrough
CT: control target
= control target key end

     0   :  { %7 = vsyncpa [#allocation3], 0  ;;  %s288_s0 = inlined_call_operand.vmem [shape: s32[16,1], index: 0, kind: input, shape index: {}]   ;;  %s289_s1 = inlined_call_operand.hbm [shape: f32[32,128], index: 1, kind: input, shape index: {}]   ;;  %s290_s2 = inlined_call_operand.hbm [shape: f32[16,128], index: 2, kind: output, shape index: {}]  }
   0x1   :  { %8 = vsyncpa [#allocation4], 0  ;;  %s231_s9 = smov [#allocation2]   ;;  %s183_s13 = scalar_lea.hbm %s289_s1, 512 }
   0x2   :  { %s16_s10 = sshll.u32 %s231_s9, 4  ;;  %p184_p0 = scmp.ne.s32.totalorder %s289_s1, %s183_s13  ;;  %s17_s10 = int_to_ptr.vmem [resolvable:$true] %s16_s10 }
   0x3   :  { %p187_p1 = scmp.lt.u32.totalorder %s183_s13, %s289_s1 }
   0x5   :  { %p189_p2 = pnand %p187_p1, %p184_p0 }
   0x7   :  { %192 = shalt.err (!%p189_p2)
}
   0x8   :  { %s193_s18 = scalar_lea.vmem %s17_s10, 512  ;;  %p198_p4 = scmp.lt.s32.totalorder %s17_s10, %s17_s10 }
   0x9   :  { %p194_p3 = scmp.ne.s32.totalorder %s17_s10, %s193_s18  ;;  %p199_p5 = scmp.lt.s32.totalorder %s193_s18, %s193_s18 }
   0xb   :  { %p200_p6 = por %p199_p5, %p198_p4 }
   0xd   :  { %p201_p7 = pnand %p200_p6, %p194_p3 }
   0xf   :  { %204 = shalt.err (!%p201_p7)
}
  0x10   :  { %s232_s19 = smov 128   ;;  %s233_s20 = smov 8  }
  0x11   :  { %22 = dma.hbm_to_vmem [thread:$0]  %s289_s1, 512, %s17_s10, [#allocation3], %s232_s19, %s232_s19, %s233_s20  }
  0x12   :  { %227 = dma.done.wait [#allocation3], 512  }
  0x13   :  { %228 = vsyncadd [#allocation3], 4294966784  ;;  %v234_v0 = vmov 0   ;;  %v26_v1 = vld [vmem:[%s288_s0] sm:$0xff]  ;;  %v43_v3 = vld [vmem:[#allocation2 + $0x8] sm:$0xff]  ;;  %v28_v9 = vlaneseq  ;;  %vm46_vm0 = vcmask 261120  }
  0x14   :  { %182 = vset.pattern.permute.xlu0 %v234_v0  ;;  %v42_v2 = vld [vmem:[#allocation2] sm:$0xff]  ;;  %v44_v4 = vld [vmem:[#allocation2 + $0x10] sm:$0xff]  ;;  %v45_v5 = vld [vmem:[#allocation2 + $0x18] sm:$0xff]  ;;  %v235_v12 = vmov 0.0  }
  0x15   :  { %31 = vperm.xlu0 %182, %v26_v1   ;;  %v27_v6 = vld [vmem:[%s288_s0 + $0x8] sm:$0xff]  ;;  %v168_v7 = vpack.c.bf16 %v43_v3, %v42_v2  ;;  %v172_v8 = vpack.c.bf16 %v45_v5, %v44_v4  ;;  %v29_v10 = vand.u32 127, %v28_v9  ;;  %s236_s0 = smov [#allocation5]  }
  0x16   :  { %s135_s1 = sshll.u32 %s236_s0, 4  ;;  %s136_s1 = int_to_ptr.vmem [resolvable:$true] %s135_s1 }
  0x17   :  { %169 = vmatprep.subr.bf16.mxu0 %v168_v7  ;;  %s205_s27 = scalar_lea.vmem %s136_s1, 256  ;;  %p210_p9 = scmp.lt.s32.totalorder %s136_s1, %s136_s1 }
  0x18   :  { %171 = vmatpush3.bf16.msra.mxu0 %v168_v7  ;;  %p206_p8 = scmp.ne.s32.totalorder %s136_s1, %s205_s27  ;;  %p211_p10 = scmp.lt.s32.totalorder %s205_s27, %s205_s27 }
  0x19   :  { %34 = vperm.xlu0 %182, %v27_v6   ;;  %173 = vmatprep.subr.bf16.mxu0 %v172_v8 }
  0x1a   :  { %p212_p11 = por %p211_p10, %p210_p9 }
  0x1c   :  { %175 = vmatpush3.bf16.msra.mxu0 %v172_v8  ;;  %p213_p12 = pnand %p212_p11, %p206_p8 }
  0x94   :  { %v32_v11 = vpop.permute.xlu0 %31 }
  0x95   :  { %vm36_vm1 = vcmp.eq.s32.totalorder %v29_v10, %v32_v11 }
  0x96   :  { %v147_v13 = vsel %vm36_vm1, 1.0, %v235_v12 }
  0x97   :  { %165 = vmatprep.mubr.msk.f32.mxu0 %vm46_vm0, %v147_v13 }
  0x98   :  { %v35_v14 = vpop.permute.xlu0 %34 }
  0x99   :  { %vm37_vm2 = vcmp.eq.s32.totalorder %v29_v10, %v35_v14 }
  0x9a   :  { %v148_v15 = vsel %vm37_vm2, 1.0, %v235_v12 }
  0x9b   :  { %166 = vmatmul.mubr.msk.f32.vlgmr.msra.gmra.mrb[0].mxu0 %vm46_vm0, %v148_v15 }
 0x16e   :  { %v167_v16 = vpop.f32.mrb[0].mxu0 }
 0x16f   :  { %129 = vst [vmem:[#allocation5 + $0x8] sm:$0xff] %v167_v16  ;;  %v119_v17 = vpop.f32.mrb[1].mxu0 }
 0x170   :  { %128 = vst [vmem:[#allocation5] sm:$0xff] %v119_v17 }
 0x171   :  { %216 = shalt.err (!%p213_p12)
}
 0x172   :  { %s217_s30 = scalar_lea.hbm %s290_s2, 256 }
 0x173   :  { %p218_p13 = scmp.ne.s32.totalorder %s290_s2, %s217_s30  ;;  %p221_p0 = scmp.lt.u32.totalorder %s217_s30, %s290_s2 }
 0x175   :  { %p223_p1 = pnand %p221_p0, %p218_p13 }
 0x177   :  { %226 = shalt.err (!%p223_p1)
}
 0x178   :  { %141 = dma.vmem_to_hbm [thread:$0]  %s136_s1, 256, %s290_s2, [#allocation4], %s232_s19, %s232_s19, %s233_s20  }
 0x179   :  { %229 = dma.done.wait [#allocation4], 256  }
 0x17a   :  { %230 = vsyncadd [#allocation4], 4294967040 }
 0x17b   :  { %145 = vsyncpa [#allocation3], 1 }
 0x17c   :  { %146 = vsyncpa [#allocation4], 1 }

// kernel: tpu_custom_call.1
= control target key start
LH: loop header
LB: loop body
LE: loop exit
PB: predicated region body
PF: predicated region fallthrough
CT: control target
= control target key end

     0   :  { %7 = vsyncpa [#allocation3], 0  ;;  %s288_s0 = inlined_call_operand.vmem [shape: s32[16,1], index: 0, kind: input, shape index: {}]   ;;  %s289_s1 = inlined_call_operand.hbm [shape: f32[32,128], index: 1, kind: input, shape index: {}]   ;;  %s290_s2 = inlined_call_operand.hbm [shape: f32[16,128], index: 2, kind: output, shape index: {}]  }
   0x1   :  { %8 = vsyncpa [#allocation4], 0  ;;  %s231_s9 = smov [#allocation2]   ;;  %s183_s13 = scalar_lea.hbm %s289_s1, 512 }
   0x2   :  { %s16_s10 = sshll.u32 %s231_s9, 4  ;;  %p184_p0 = scmp.ne.s32.totalorder %s289_s1, %s183_s13  ;;  %s17_s10 = int_to_ptr.vmem [resolvable:$true] %s16_s10 }
   0x3   :  { %p187_p1 = scmp.lt.u32.totalorder %s183_s13, %s289_s1 }
   0x5   :  { %p189_p2 = pnand %p187_p1, %p184_p0 }
   0x7   :  { %192 = shalt.err (!%p189_p2)
}
   0x8   :  { %s193_s18 = scalar_lea.vmem %s17_s10, 512  ;;  %p198_p4 = scmp.lt.s32.totalorder %s17_s10, %s17_s10 }
   0x9   :  { %p194_p3 = scmp.ne.s32.totalorder %s17_s10, %s193_s18  ;;  %p199_p5 = scmp.lt.s32.totalorder %s193_s18, %s193_s18 }
   0xb   :  { %p200_p6 = por %p199_p5, %p198_p4 }
   0xd   :  { %p201_p7 = pnand %p200_p6, %p194_p3 }
   0xf   :  { %204 = shalt.err (!%p201_p7)
}
  0x10   :  { %s232_s19 = smov 128   ;;  %s233_s20 = smov 8  }
  0x11   :  { %22 = dma.hbm_to_vmem [thread:$0]  %s289_s1, 512, %s17_s10, [#allocation3], %s232_s19, %s232_s19, %s233_s20  }
  0x12   :  { %227 = dma.done.wait [#allocation3], 512  }
  0x13   :  { %228 = vsyncadd [#allocation3], 4294966784  ;;  %v234_v0 = vmov 0   ;;  %v26_v1 = vld [vmem:[%s288_s0] sm:$0xff]  ;;  %v43_v3 = vld [vmem:[#allocation2 + $0x8] sm:$0xff]  ;;  %v28_v9 = vlaneseq  ;;  %vm46_vm0 = vcmask 261120  }
  0x14   :  { %182 = vset.pattern.permute.xlu0 %v234_v0  ;;  %v42_v2 = vld [vmem:[#allocation2] sm:$0xff]  ;;  %v44_v4 = vld [vmem:[#allocation2 + $0x10] sm:$0xff]  ;;  %v45_v5 = vld [vmem:[#allocation2 + $0x18] sm:$0xff]  ;;  %v235_v12 = vmov 0.0  }
  0x15   :  { %31 = vperm.xlu0 %182, %v26_v1   ;;  %v27_v6 = vld [vmem:[%s288_s0 + $0x8] sm:$0xff]  ;;  %v168_v7 = vpack.c.bf16 %v43_v3, %v42_v2  ;;  %v172_v8 = vpack.c.bf16 %v45_v5, %v44_v4  ;;  %v29_v10 = vand.u32 127, %v28_v9  ;;  %s236_s0 = smov [#allocation5]  }
  0x16   :  { %s135_s1 = sshll.u32 %s236_s0, 4  ;;  %s136_s1 = int_to_ptr.vmem [resolvable:$true] %s135_s1 }
  0x17   :  { %169 = vmatprep.subr.bf16.mxu0 %v168_v7  ;;  %s205_s27 = scalar_lea.vmem %s136_s1, 256  ;;  %p210_p9 = scmp.lt.s32.totalorder %s136_s1, %s136_s1 }
  0x18   :  { %171 = vmatpush3.bf16.msra.mxu0 %v168_v7  ;;  %p206_p8 = scmp.ne.s32.totalorder %s136_s1, %s205_s27  ;;  %p211_p10 = scmp.lt.s32.totalorder %s205_s27, %s205_s27 }
  0x19   :  { %34 = vperm.xlu0 %182, %v27_v6   ;;  %173 = vmatprep.subr.bf16.mxu0 %v172_v8 }
  0x1a   :  { %p212_p11 = por %p211_p10, %p210_p9 }
  0x1c   :  { %175 = vmatpush3.bf16.msra.mxu0 %v172_v8  ;;  %p213_p12 = pnand %p212_p11, %p206_p8 }
  0x94   :  { %v32_v11 = vpop.permute.xlu0 %31 }
  0x95   :  { %vm36_vm1 = vcmp.eq.s32.totalorder %v29_v10, %v32_v11 }
  0x96   :  { %v147_v13 = vsel %vm36_vm1, 1.0, %v235_v12 }
  0x97   :  { %165 = vmatprep.mubr.msk.f32.mxu0 %vm46_vm0, %v147_v13 }
  0x98   :  { %v35_v14 = vpop.permute.xlu0 %34 }
  0x99   :  { %vm37_vm2 = vcmp.eq.s32.totalorder %v29_v10, %v35_v14 }
  0x9a   :  { %v148_v15 = vsel %vm37_vm2, 1.0, %v235_v12 }
  0x9b   :  { %166 = vmatmul.mubr.msk.f32.vlgmr.msra.gmra.mrb[0].mxu0 %vm46_vm0, %v148_v15 }
 0x16e   :  { %v167_v16 = vpop.f32.mrb[0].mxu0 }
 0x16f   :  { %129 = vst [vmem:[#allocation5 + $0x8] sm:$0xff] %v167_v16  ;;  %v119_v17 = vpop.f32.mrb[1].mxu0 }
 0x170   :  { %128 = vst [vmem:[#allocation5] sm:$0xff] %v119_v17 }
 0x171   :  { %216 = shalt.err (!%p213_p12)
}
 0x172   :  { %s217_s30 = scalar_lea.hbm %s290_s2, 256 }
 0x173   :  { %p218_p13 = scmp.ne.s32.totalorder %s290_s2, %s217_s30  ;;  %p221_p0 = scmp.lt.u32.totalorder %s217_s30, %s290_s2 }
 0x175   :  { %p223_p1 = pnand %p221_p0, %p218_p13 }
 0x177   :  { %226 = shalt.err (!%p223_p1)
}
 0x178   :  { %141 = dma.vmem_to_hbm [thread:$0]  %s136_s1, 256, %s290_s2, [#allocation4], %s232_s19, %s232_s19, %s233_s20  }
 0x179   :  { %229 = dma.done.wait [#allocation4], 256  }
 0x17a   :  { %230 = vsyncadd [#allocation4], 4294967040 }
 0x17b   :  { %145 = vsyncpa [#allocation3], 1 }
 0x17c   :  { %146 = vsyncpa [#allocation4], 1 }

</bundles_post_ra>
